<compile_context>
chip_gen: v6e
topology: v6e:2x2x1
jax: 0.10.0
libtpu: 0.0.40
codegen_flags: <defaults>
</compile_context>

<pallas_src>
import functools
from typing import NamedTuple

import jax
import jax.numpy as jnp
from jax.experimental import pallas as pl
from jax.experimental.pallas import tpu as pltpu


def _round_up(x: int, m: int) -> int:
    return (x + m - 1) // m * m


class Meta(NamedTuple):
    state_dim: int
    action_dim: int
    hidden_pad: int   # hidden width padded to a multiple of 128
    out_dim: int      # true output width (= state_dim), written unpadded
    n_hidden: int     # number of hidden->hidden linears


def _make_kernel(n_hidden: int, hidden_pad: int, out_dim: int):
    """MLP kernel. Ref order: sa, w1, *w_hidden, w_out, b_packed, out."""

    def kernel(*refs):
        sa_ref = refs[0]
        w1_ref = refs[1]
        w_hidden_refs = refs[2:2 + n_hidden]
        w_out_ref = refs[2 + n_hidden]
        b_ref = refs[3 + n_hidden]
        out_ref = refs[4 + n_hidden]

        # Layer 1: bf16 operands, f32 accumulation on the MXU.
        h = jnp.dot(sa_ref[...].astype(jnp.bfloat16), w1_ref[...],
                    preferred_element_type=jnp.float32)
        h = jnp.maximum(h + b_ref[0:1, :hidden_pad], 0.0)

        # Hidden layers (statically unrolled).
        for li in range(n_hidden):
            h = jnp.dot(h.astype(jnp.bfloat16), w_hidden_refs[li][...],
                        preferred_element_type=jnp.float32)
            h = jnp.maximum(h + b_ref[li + 1:li + 2, :hidden_pad], 0.0)

        # Output layer (no activation), written at true width.
        y = jnp.dot(h.astype(jnp.bfloat16), w_out_ref[...],
                    preferred_element_type=jnp.float32)
        out_ref[...] = (y + b_ref[n_hidden + 1:n_hidden + 2, :out_dim]
                        ).astype(out_ref.dtype)

    return kernel


def prepare_params(params, state_dim: int):
    """One-time prep: pad feature dims to 128 multiples, cast weights to bf16,
    pack all biases into a single f32 array. Returns (arrays, static meta)."""
    weights = [jnp.asarray(w, jnp.float32) for w in params[0::2]]
    biases = [jnp.asarray(b, jnp.float32).reshape(-1) for b in params[1::2]]

    in_dim = weights[0].shape[0]
    action_dim = in_dim - state_dim
    hidden_dim = weights[0].shape[1]
    out_dim = weights[-1].shape[1]

    HP = _round_up(hidden_dim, 128)                 # padded hidden width
    BP = max(HP, _round_up(out_dim, 128))           # packed-bias lane width

    def pad2(a, rows, cols):
        return jnp.pad(a, ((0, rows - a.shape[0]), (0, cols - a.shape[1])))

    w1 = pad2(weights[0], in_dim, HP).astype(jnp.bfloat16)
    w_hidden = tuple(pad2(w, HP, HP).astype(jnp.bfloat16)
                     for w in weights[1:-1])
    w_out = pad2(weights[-1], HP, out_dim).astype(jnp.bfloat16)

    b_packed = jnp.zeros((len(weights), BP), jnp.float32)
    for i, b in enumerate(biases):
        b_packed = b_packed.at[i, :b.shape[0]].set(b)

    arrays = {"w1": w1, "w_hidden": w_hidden, "w_out": w_out, "b": b_packed}
    meta = Meta(state_dim=state_dim, action_dim=action_dim, hidden_pad=HP,
                out_dim=out_dim, n_hidden=len(w_hidden))
    return arrays, meta


@functools.partial(jax.jit, static_argnames=("meta", "tile_b"))
def system_network_forward(state, action, arrays, *, meta: Meta,
                           tile_b: int = 512):
    """state: [B, state_dim], action: [B, action_dim] -> [B, state_dim]."""
    B = state.shape[0]
    in_dim = meta.state_dim + meta.action_dim
    HP, out_dim, n_hidden = meta.hidden_pad, meta.out_dim, meta.n_hidden

    # Fuse concat in the wrapper: one [B, sd+ad] input -> one DMA stream and a
    # single layer-1 matmul per tile.
    sa = jnp.concatenate([state.astype(jnp.float32),
                          action.astype(jnp.float32)], axis=1)

    # --- batch tiling -------------------------------------------------------
    tile_b = max(8, (int(tile_b) // 8) * 8)          # (8,128) block constraint
    B8 = _round_up(B, 8)
    if B8 >= 16:
        # Cap the tile so the grid has >= 2 steps: both v7x TensorCores get
        # work and activation/output DMAs pipeline against compute.
        tile_b = min(tile_b, _round_up(-(-B8 // 2), 8))
    else:
        tile_b = 8
    Bp = _round_up(B, tile_b)
    if Bp != B:
        sa = jnp.pad(sa, ((0, Bp - B), (0, 0)))
    grid = (Bp // tile_b,)

    vmem = pltpu.MemorySpace.VMEM

    def resident(arr):
        # Constant block index -> stays resident in VMEM across batch tiles.
        return pl.BlockSpec(arr.shape, lambda i: (0, 0), memory_space=vmem)

    kernel = _make_kernel(n_hidden, HP, out_dim)

    inputs = (sa, arrays["w1"], *arrays["w_hidden"], arrays["w_out"],
              arrays["b"])
    flops = 2 * Bp * (in_dim * HP + n_hidden * HP * HP + HP * out_dim)
    bytes_accessed = sum(int(x.size) * x.dtype.itemsize for x in inputs) \
        + Bp * out_dim * 4

    out = pl.pallas_call(
        kernel,
        out_shape=jax.ShapeDtypeStruct((Bp, out_dim), jnp.float32),
        grid=grid,
        in_specs=[pl.BlockSpec((tile_b, in_dim), lambda i: (i, 0),
                               memory_space=vmem),
                  resident(arrays["w1"]),
                  *[resident(w) for w in arrays["w_hidden"]],
                  resident(arrays["w_out"]),
                  resident(arrays["b"])],
        out_specs=pl.BlockSpec((tile_b, out_dim), lambda i: (i, 0),
                               memory_space=vmem),
        compiler_params=pltpu.CompilerParams(
            dimension_semantics=("parallel",),
            # Explicit scoped-VMEM limit with headroom; safe on v5e/v6e (128
            # MiB physical) and under v7x's 64 MiB. Bump if tile_b/hidden grow.
            vmem_limit_bytes=32 * 1024 * 1024),
        cost_estimate=pl.CostEstimate(flops=flops, transcendentals=0,
                                      bytes_accessed=bytes_accessed),
    )(*inputs)

    return out if Bp == B else out[:B]


def init_params(key, state_dim, action_dim, hidden_dim, n_layers=2):
    """nn.Linear-style U(-1/sqrt(fan_in), 1/sqrt(fan_in)) init.
    Weights stored transposed relative to PyTorch: [in, out]; biases [out]."""
    dims = [state_dim + action_dim] + [hidden_dim] * n_layers + [state_dim]
    params = []
    keys = jax.random.split(key, 2 * (len(dims) - 1))
    for i in range(len(dims) - 1):
        fan_in, fan_out = dims[i], dims[i + 1]
        bound = 1.0 / jnp.sqrt(jnp.float32(fan_in))
        w = jax.random.uniform(keys[2 * i], (fan_in, fan_out),
                               minval=-bound, maxval=bound, dtype=jnp.float32)
        b = jax.random.uniform(keys[2 * i + 1], (fan_out,),
                               minval=-bound, maxval=bound, dtype=jnp.float32)
        params.extend([w, b])
    return tuple(params)


def _reference(state, action, params):
    weights = params[0::2]
    biases = params[1::2]
    h = jnp.concatenate([state, action], axis=1)
    for w, b in zip(weights[:-1], biases[:-1]):
        h = jnp.maximum(h @ w + b, 0.0)
    return h @ weights[-1] + biases[-1]


if __name__ == "__main__":
    # Small shapes consistent with the module's forward.
    B, state_dim, action_dim, hidden_dim, n_layers = 8, 16, 8, 32, 2

    key = jax.random.PRNGKey(0)
    k_state, k_action, k_params, k_state2, k_action2 = jax.random.split(key, 5)
    state = jax.random.normal(k_state, (B, state_dim), dtype=jnp.float32)
    action = jax.random.normal(k_action, (B, action_dim), dtype=jnp.float32)

    params = init_params(k_params, state_dim, action_dim, hidden_dim, n_layers)
    arrays, meta = prepare_params(params, state_dim)

    out = jax.block_until_ready(
        system_network_forward(state, action, arrays, meta=meta))
    ref = _reference(state, action, params)
    assert out.shape == (B, state_dim)
    # bf16 matmul operands with f32 accumulation -> slightly looser tolerance.
    assert jnp.allclose(out, ref, atol=1e-2, rtol=1e-2), \
        float(jnp.max(jnp.abs(out - ref)))

    # Second check: batch not a multiple of the tile -> multi-tile grid + pad,
    # non-aligned user tile_b exercises the multiple-of-8 guard.
    B2 = 20
    state2 = jax.random.normal(k_state2, (B2, state_dim), dtype=jnp.float32)
    action2 = jax.random.normal(k_action2, (B2, action_dim), dtype=jnp.float32)
    out2 = jax.block_until_ready(
        system_network_forward(state2, action2, arrays, meta=meta, tile_b=12))
    ref2 = _reference(state2, action2, params)
    assert out2.shape == (B2, state_dim)
    assert jnp.allclose(out2, ref2, atol=1e-2, rtol=1e-2), \
        float(jnp.max(jnp.abs(out2 - ref2)))

    print("KERNEL_OK")
</pallas_src>

<mosaic_0001>
module attributes {stable_mosaic.version = 11 : i64} {
  func.func @kernel(%arg0: i32, %arg1: memref<8x24xf32, #tpu.memory_space<vmem>>, %arg2: memref<24x128xbf16, #tpu.memory_space<vmem>>, %arg3: memref<128x128xbf16, #tpu.memory_space<vmem>>, %arg4: memref<128x16xbf16, #tpu.memory_space<vmem>>, %arg5: memref<3x128xf32, #tpu.memory_space<vmem>>, %arg6: memref<8x16xf32, #tpu.memory_space<vmem>>) attributes {dimension_semantics = [#tpu.dimension_semantics<parallel>], iteration_bounds = array<i64: 1>, scalar_prefetch = 0 : i64, scratch_operands = 0 : i64, tpu.core_type = #tpu.core_type<tc>, window_params = [{transform_indices = @transform_0, window_bounds = array<i64: 8, 24>}, {pipeline_mode = #tpu.pipeline_mode<synchronous>, transform_indices = @transform_1, window_bounds = array<i64: 24, 128>}, {pipeline_mode = #tpu.pipeline_mode<synchronous>, transform_indices = @transform_2, window_bounds = array<i64: 128, 128>}, {pipeline_mode = #tpu.pipeline_mode<synchronous>, transform_indices = @transform_3, window_bounds = array<i64: 128, 16>}, {pipeline_mode = #tpu.pipeline_mode<synchronous>, transform_indices = @transform_4, window_bounds = array<i64: 3, 128>}, {transform_indices = @transform_5, window_bounds = array<i64: 8, 16>}]} {
    %c0 = arith.constant 0 : index
    %c0_0 = arith.constant 0 : index
    %0 = vector.load %arg1[%c0, %c0_0] : memref<8x24xf32, #tpu.memory_space<vmem>>, vector<8x24xf32>
    %1 = arith.truncf %0 : vector<8x24xf32> to vector<8x24xbf16>
    %c0_1 = arith.constant 0 : index
    %c0_2 = arith.constant 0 : index
    %2 = vector.load %arg2[%c0_1, %c0_2] : memref<24x128xbf16, #tpu.memory_space<vmem>>, vector<24x128xbf16>
    %cst = arith.constant dense<0.000000e+00> : vector<8x128xf32>
    %3 = tpu.matmul %1, %2, %cst {dimension_numbers = #tpu.dot_dimension_numbers<[1], [0], [0], [1], [0, 0, 1, 1], [], []>} : vector<8x24xbf16>, vector<24x128xbf16>, vector<8x128xf32> -> vector<8x128xf32>
    %c0_3 = arith.constant 0 : index
    %c0_4 = arith.constant 0 : index
    %4 = vector.load %arg5[%c0_3, %c0_4] : memref<3x128xf32, #tpu.memory_space<vmem>>, vector<1x128xf32>
    %5 = vector.broadcast %4 : vector<1x128xf32> to vector<8x128xf32>
    %6 = arith.addf %3, %5 : vector<8x128xf32>
    %cst_5 = arith.constant 0.000000e+00 : f32
    %7 = vector.broadcast %cst_5 : f32 to vector<8x128xf32>
    %8 = arith.maximumf %6, %7 : vector<8x128xf32>
    %9 = arith.truncf %8 : vector<8x128xf32> to vector<8x128xbf16>
    %c0_6 = arith.constant 0 : index
    %c0_7 = arith.constant 0 : index
    %10 = vector.load %arg3[%c0_6, %c0_7] : memref<128x128xbf16, #tpu.memory_space<vmem>>, vector<128x128xbf16>
    %cst_8 = arith.constant dense<0.000000e+00> : vector<8x128xf32>
    %11 = tpu.matmul %9, %10, %cst_8 {dimension_numbers = #tpu.dot_dimension_numbers<[1], [0], [0], [1], [0, 0, 1, 1], [], []>} : vector<8x128xbf16>, vector<128x128xbf16>, vector<8x128xf32> -> vector<8x128xf32>
    %c1 = arith.constant 1 : index
    %c0_9 = arith.constant 0 : index
    %12 = vector.load %arg5[%c1, %c0_9] : memref<3x128xf32, #tpu.memory_space<vmem>>, vector<1x128xf32>
    %13 = vector.broadcast %12 : vector<1x128xf32> to vector<8x128xf32>
    %14 = arith.addf %11, %13 : vector<8x128xf32>
    %cst_10 = arith.constant 0.000000e+00 : f32
    %15 = vector.broadcast %cst_10 : f32 to vector<8x128xf32>
    %16 = arith.maximumf %14, %15 : vector<8x128xf32>
    %17 = arith.truncf %16 : vector<8x128xf32> to vector<8x128xbf16>
    %c0_11 = arith.constant 0 : index
    %c0_12 = arith.constant 0 : index
    %18 = vector.load %arg4[%c0_11, %c0_12] : memref<128x16xbf16, #tpu.memory_space<vmem>>, vector<128x16xbf16>
    %cst_13 = arith.constant dense<0.000000e+00> : vector<8x16xf32>
    %19 = tpu.matmul %17, %18, %cst_13 {dimension_numbers = #tpu.dot_dimension_numbers<[1], [0], [0], [1], [0, 0, 1, 1], [], []>} : vector<8x128xbf16>, vector<128x16xbf16>, vector<8x16xf32> -> vector<8x16xf32>
    %c2 = arith.constant 2 : index
    %c0_14 = arith.constant 0 : index
    %20 = vector.load %arg5[%c2, %c0_14] : memref<3x128xf32, #tpu.memory_space<vmem>>, vector<1x16xf32>
    %21 = vector.broadcast %20 : vector<1x16xf32> to vector<8x16xf32>
    %22 = arith.addf %19, %21 : vector<8x16xf32>
    %c0_15 = arith.constant 0 : index
    %c0_16 = arith.constant 0 : index
    %23 = vector.load %arg6[%c0_15, %c0_16] : memref<8x16xf32, #tpu.memory_space<vmem>>, vector<8x16xf32>
    tpu.vector_store %arg6[%c0_15, %c0_16], %22 {strides = array<i32>} : memref<8x16xf32, #tpu.memory_space<vmem>>, vector<8x16xf32>,
    return
  }
  func.func @transform_0(%arg0: i32) -> (i32, i32) {
    %c0_i32 = arith.constant 0 : i32
    %c0_i32_0 = arith.constant 0 : i32
    return %arg0, %c0_i32 : i32, i32
  }
  func.func @transform_1(%arg0: i32) -> (i32, i32) {
    %c0_i32 = arith.constant 0 : i32
    %c0_i32_0 = arith.constant 0 : i32
    %c0_i32_1 = arith.constant 0 : i32
    return %c0_i32, %c0_i32_0 : i32, i32
  }
  func.func @transform_2(%arg0: i32) -> (i32, i32) {
    %c0_i32 = arith.constant 0 : i32
    %c0_i32_0 = arith.constant 0 : i32
    %c0_i32_1 = arith.constant 0 : i32
    return %c0_i32, %c0_i32_0 : i32, i32
  }
  func.func @transform_3(%arg0: i32) -> (i32, i32) {
    %c0_i32 = arith.constant 0 : i32
    %c0_i32_0 = arith.constant 0 : i32
    %c0_i32_1 = arith.constant 0 : i32
    return %c0_i32, %c0_i32_0 : i32, i32
  }
  func.func @transform_4(%arg0: i32) -> (i32, i32) {
    %c0_i32 = arith.constant 0 : i32
    %c0_i32_0 = arith.constant 0 : i32
    %c0_i32_1 = arith.constant 0 : i32
    return %c0_i32, %c0_i32_0 : i32, i32
  }
  func.func @transform_5(%arg0: i32) -> (i32, i32) {
    %c0_i32 = arith.constant 0 : i32
    %c0_i32_0 = arith.constant 0 : i32
    return %arg0, %c0_i32 : i32, i32
  }
}

</mosaic_0001>

<bundles_post_ra>
// kernel: system_network_forward.1
= control target key start
LH: loop header
LB: loop body
LE: loop exit
PB: predicated region body
PF: predicated region fallthrough
CT: control target
= control target key end

     0   :  { %vm45_vm0 = vcmask 1043456   ;;  %v461_v1 = vmov 0.0   ;;  %vm462_vm1 = vmmov 0   ;;  %vm41_vm2 = vcmask 195584   ;;  %s587_s0 = inlined_call_operand.vmem [shape: f32[8,24], index: 0, kind: input, shape index: {}]   ;;  %s588_s1 = inlined_call_operand.vmem [shape: bf16[24,128], index: 1, kind: input, shape index: {}]   ;;  %s589_s2 = inlined_call_operand.vmem [shape: bf16[128,128], index: 2, kind: input, shape index: {}]   ;;  %s590_s3 = inlined_call_operand.vmem [shape: bf16[128,16], index: 3, kind: input, shape index: {}]   ;;  %s591_s4 = inlined_call_operand.vmem [shape: f32[3,128], index: 4, kind: input, shape index: {}]   ;;  %s592_s5 = inlined_call_operand.hbm [shape: f32[8,16], index: 5, kind: output, shape index: {}]  }
   0x1   :  { %v421_v0 = vld [vmem:[%s588_s1 + $0x8] ss:$0 sps:$4 sm:$0xff]   ;;  %370 = vmatprep.subr.bf16.mxu0 %v461_v1  ;;  %v422_v2 = vld [vmem:[%s588_s1] sm:$0xff]   ;;  %378 = vmatprep.subr.bf16.mxu1 %v461_v1  ;;  %v423_v5 = vld [vmem:[%s589_s2 + $0x38] sm:$0xff]  }
   0x2   :  { %v47_v3 = vsel %vm45_vm0, %v421_v0, 0  ;;  %374 = vmatprep.mubr.msk.bf16.mxu0 %vm462_vm1, %v461_v1  ;;  %v22_v4 = vld [vmem:[%s587_s0] sm:$0xff]  ;;  %394 = vmatprep.mubr.msk.bf16.mxu1 %vm462_vm1, %v461_v1  ;;  %v424_v6 = vld [vmem:[%s589_s2 + $0x30] sm:$0xff]   ;;  %v425_v8 = vld [vmem:[%s589_s2 + $0x28] sm:$0xff]  }
   0x3   :  { %371 = vmatpush3.bf16.msra.mxu0 %v47_v3  ;;  %379 = vmatpush3.bf16.msra.mxu1 %v423_v5  ;;  %v23_v7 = vpack.c.bf16 %v22_v4, %v22_v4  ;;  %v426_v9 = vld [vmem:[%s589_s2 + $0x20] sm:$0xff]  }
   0x4   :  { %372 = vmatprep.subr.bf16.mxu0 %v461_v1  ;;  %380 = vmatprep.subr.bf16.mxu1 %v461_v1 }
   0x7   :  { %373 = vmatpush3.bf16.msra.mxu0 %v422_v2  ;;  %381 = vmatpush3.bf16.msra.mxu1 %v424_v6 }
   0x8   :  { %398 = vmatprep.subr.bf16.mxu0 %v461_v1  ;;  %382 = vmatprep.subr.bf16.mxu1 %v461_v1 }
   0xa   :  { %375 = vmatmul.mubr.msk.bf16.vlgmr.msra.gmra.mxu0 %vm41_vm2, %v23_v7 }
   0xb   :  { %414 = vmatprep.mubr.msk.bf16.mxu0 %vm462_vm1, %v461_v1  ;;  %383 = vmatpush3.bf16.msra.mxu1 %v425_v8 }
   0xc   :  { %384 = vmatprep.subr.bf16.mxu1 %v461_v1 }
   0xd   :  { %10 = vsyncpa [#allocation3], 0  ;;  %v427_v10 = vld [vmem:[%s589_s2 + $0x18] sm:$0xff]   ;;  %v428_v11 = vld [vmem:[%s589_s2 + $0x10] sm:$0xff]   ;;  %s463_s7 = smov [#allocation2]   ;;  %vm311_vm3 = vcmask 130048  }
   0xe   :  { %v429_v12 = vld [vmem:[%s589_s2 + $0x8] sm:$0xff]   ;;  %v430_v13 = vld [vmem:[%s589_s2] sm:$0xff]   ;;  %v431_v14 = vld [vmem:[%s590_s3 + $0x38] sm:$0xff]   ;;  %s319_s8 = sshll.u32 %s463_s7, 4  ;;  %s320_s8 = int_to_ptr.vmem [resolvable:$true] %s319_s8 }
   0xf   :  { %385 = vmatpush3.bf16.msra.mxu1 %v426_v9  ;;  %399 = vmatpush3.bf16.msra.mxu0 %v431_v14  ;;  %v432_v15 = vld [vmem:[%s590_s3 + $0x30] sm:$0xff]   ;;  %v433_v16 = vld [vmem:[%s590_s3 + $0x28] sm:$0xff]   ;;  %v434_v17 = vld [vmem:[%s590_s3 + $0x20] sm:$0xff]   ;;  %p444_p1 = scmp.lt.s32.totalorder %s320_s8, %s320_s8 }
  0x10   :  { %386 = vmatprep.subr.bf16.mxu1 %v461_v1  ;;  %400 = vmatprep.subr.bf16.mxu0 %v461_v1  ;;  %v435_v18 = vld [vmem:[%s590_s3 + $0x18] sm:$0xff]   ;;  %v436_v19 = vld [vmem:[%s590_s3 + $0x10] sm:$0xff]   ;;  %v327_v20 = vld [vmem:[%s591_s4] ss:$0 sm:$0xff] }
  0x11   :  { %v437_v28 = vld [vmem:[%s590_s3 + $0x8] sm:$0xff]   ;;  %v438_v29 = vld [vmem:[%s590_s3] sm:$0xff]   ;;  %s439_s3 = scalar_lea.vmem %s320_s8, 128 }
  0x12   :  { %v331_v30 = vld [vmem:[%s591_s4 + $0x1] ss:$0 sm:$0xff]  ;;  %v340_v38 = vld [vmem:[%s591_s4 + $0x2] ss:$0 sm:$0xff]  ;;  %p440_p0 = scmp.ne.s32.totalorder %s320_s8, %s439_s3  ;;  %p445_p2 = scmp.lt.s32.totalorder %s439_s3, %s439_s3 }
  0x13   :  { %387 = vmatpush3.bf16.msra.mxu1 %v427_v10  ;;  %401 = vmatpush3.bf16.msra.mxu0 %v432_v15 }
  0x14   :  { %388 = vmatprep.subr.bf16.mxu1 %v461_v1  ;;  %402 = vmatprep.subr.bf16.mxu0 %v461_v1  ;;  %p446_p3 = por %p445_p2, %p444_p1 }
  0x16   :  { %p447_p4 = pnand %p446_p3, %p440_p0 }
  0x17   :  { %389 = vmatpush3.bf16.msra.mxu1 %v428_v11  ;;  %403 = vmatpush3.bf16.msra.mxu0 %v433_v16 }
  0x18   :  { %390 = vmatprep.subr.bf16.mxu1 %v461_v1  ;;  %404 = vmatprep.subr.bf16.mxu0 %v461_v1 }
  0x1b   :  { %391 = vmatpush3.bf16.msra.mxu1 %v429_v12  ;;  %405 = vmatpush3.bf16.msra.mxu0 %v434_v17 }
  0x1c   :  { %392 = vmatprep.subr.bf16.mxu1 %v461_v1  ;;  %406 = vmatprep.subr.bf16.mxu0 %v461_v1 }
  0x1f   :  { %393 = vmatpush3.bf16.msra.mxu1 %v430_v13  ;;  %407 = vmatpush3.bf16.msra.mxu0 %v435_v18 }
  0x20   :  { %408 = vmatprep.subr.bf16.mxu0 %v461_v1 }
  0x23   :  { %409 = vmatpush3.bf16.msra.mxu0 %v436_v19 }
  0x24   :  { %410 = vmatprep.subr.bf16.mxu0 %v461_v1 }
  0x27   :  { %411 = vmatpush3.bf16.msra.mxu0 %v437_v28 }
  0x28   :  { %412 = vmatprep.subr.bf16.mxu0 %v461_v1 }
  0x2b   :  { %413 = vmatpush3.bf16.msra.mxu0 %v438_v29 }
  0xca   :  { %v83_v21 = vpop.f32.mrf.mxu0 }
  0xcb   :  { %v84_v22 = vadd.f32 %v327_v20, %v83_v21 }
  0xcc   :  { %v376_v23 = vpop.f32.mrf.mxu0 }
  0xcd   :  { %v89_v24 = vmax.f32 %v84_v22, 0.0 }
  0xce   :  { %v86_v25 = vpop.f32.mrf.mxu0 }
  0xcf   :  { %v90_v26 = vpack.c.bf16 %v89_v24, %v89_v24 }
  0xd0   :  { %v377_v27 = vpop.f32.mrf.mxu0 }
  0xd1   :  { %395 = vmatmul.mubr.bf16.vlgmr.msra.gmra.mxu1 %v90_v26 }
 0x191   :  { %v194_v31 = vpop.f32.mrf.mxu1 }
 0x192   :  { %v195_v32 = vadd.f32 %v331_v30, %v194_v31 }
 0x193   :  { %v396_v33 = vpop.f32.mrf.mxu1 }
 0x194   :  { %v200_v34 = vmax.f32 %v195_v32, 0.0 }
 0x195   :  { %v197_v35 = vpop.f32.mrf.mxu1 }
 0x196   :  { %v201_v36 = vpack.c.bf16 %v200_v34, %v200_v34 }
 0x197   :  { %v397_v37 = vpop.f32.mrf.mxu1 }
 0x198   :  { %415 = vmatmul.mubr.bf16.vlgmr.msra.gmra.mxu0 %v201_v36 }
 0x258   :  { %v305_v39 = vpop.f32.mrf.mxu0 }
 0x259   :  { %v306_v40 = vadd.f32 %v340_v38, %v305_v39 }
 0x25a   :  { %v416_v41 = vpop.f32.mrf.mxu0 }
 0x25b   :  { %312 = vst.msk [vmem:[#allocation2] sm:$0xff] %vm311_vm3, %v306_v40 }
 0x25c   :  { %v308_v42 = vpop.f32.mrf.mxu0 }
 0x25d   :  { %450 = shalt.err (!%p447_p4)
}
 0x25e   :  { %322 = dma.vmem_to_hbm [thread:$0]  %s320_s8, 128, %s592_s5, [#allocation3]   ;;  %v417_v43 = vpop.f32.mrf.mxu0 }
 0x25f   :  { %459 = dma.done.wait [#allocation3], 128  }
 0x260   :  { %460 = vsyncadd [#allocation3], 4294967168 }
 0x261   :  { %326 = vsyncpa [#allocation3], 1 }

</bundles_post_ra>
